<compile_context>
chip_gen: v6e
topology: v6e:2x2x1
jax: 0.10.0
libtpu: 0.0.40
codegen_flags: <defaults>
</compile_context>

<pallas_src>
import math

import jax
import jax.numpy as jnp
from jax.experimental import pallas as pl
from jax.experimental.pallas import tpu as pltpu


def _round_up(a: int, b: int) -> int:
    return -(-a // b) * b


def _apelu_kernel(ab_ref, x_ref, o_ref):
    """ab_ref: (2,) f32 in SMEM -> [alpha, beta]. x_ref/o_ref: (block_rows, lanes) VMEM tiles."""
    alpha = ab_ref[0]
    beta = ab_ref[1]

    # Native dtype through HBM; compute in f32 in-register.
    x = x_ref[...].astype(jnp.float32)

    # Negative branch: alpha * x * exp(beta * x)  (exp issues on the EUP slot).
    neg = alpha * x * jnp.exp(beta * x)

    # x >= 0, NaN (NaN < 0 is False) and +inf all take the x path; only x < 0
    # takes the parametric branch.
    out = jnp.where(x < 0, neg, x)
    # -inf would give -inf * exp(-inf) = NaN in the negative branch; the module
    # passes infinities through, so override just -inf (+inf already passes).
    out = jnp.where(x == -jnp.inf, x, out)

    o_ref[...] = out.astype(o_ref.dtype)


def apelu_forward(x, alpha, beta, *, target_tile_bytes=2 << 20):
    """Applies APELU elementwise to `x` (any shape) with scalar params alpha, beta."""
    orig_shape = x.shape
    orig_dtype = x.dtype
    total = int(math.prod(orig_shape)) if orig_shape else 1

    # Keep the native floating dtype in HBM (halves DMA bytes for bf16/f16).
    io_dtype = orig_dtype if jnp.issubdtype(orig_dtype, jnp.floating) else jnp.float32
    flat = jnp.ravel(x).astype(io_dtype)

    # Pick a lane-dense width that divides the flattened size so no wrapper-side
    # pad / post-slice copy is needed (the common case for activations);
    # otherwise fall back to a single padded 128-lane slab.
    padded_total = total
    lanes = None
    for cand in (512, 256, 128):
        if total % cand == 0:
            lanes = cand
            break
    if lanes is None:
        lanes = 128
        padded_total = _round_up(total, lanes)
        flat = jnp.pad(flat, (0, padded_total - total))
    rows = padded_total // lanes
    x2d = flat.reshape(rows, lanes)

    itemsize = jnp.dtype(io_dtype).itemsize
    # ~2 MiB tiles: big enough to amortize per-grid-step overhead on v6e/v7x,
    # small enough that 2 inputs + 2 outputs (double-buffered) fit v5e's
    # default scoped VMEM as well.
    block_rows = max(8, (target_tile_bytes // (lanes * itemsize)) // 8 * 8)
    if rows >= 16:
        # Keep >=2 grid blocks so both v7x TensorCores get work.
        block_rows = min(block_rows, _round_up(-(-rows // 2), 8))
    if block_rows >= rows:
        block_rows = rows  # single block spanning the full array (always legal)
    num_blocks = pl.cdiv(rows, block_rows)

    ab = jnp.stack(
        [jnp.asarray(alpha, jnp.float32), jnp.asarray(beta, jnp.float32)]
    )  # (2,) scalars -> SMEM

    out2d = pl.pallas_call(
        _apelu_kernel,
        out_shape=jax.ShapeDtypeStruct((rows, lanes), io_dtype),
        grid=(num_blocks,),
        in_specs=[
            pl.BlockSpec(memory_space=pltpu.MemorySpace.SMEM),    # [alpha, beta]
            pl.BlockSpec((block_rows, lanes), lambda i: (i, 0)),  # x tile
        ],
        out_specs=pl.BlockSpec((block_rows, lanes), lambda i: (i, 0)),
        compiler_params=pltpu.CompilerParams(
            dimension_semantics=("parallel",),  # independent row blocks
            vmem_limit_bytes=32 << 20,
        ),
    )(ab, x2d)

    out = out2d.reshape(-1)
    if padded_total != total:
        out = out[:total]
    return out.reshape(orig_shape).astype(orig_dtype)


def _reference_apelu(x, alpha, beta):
    """Pure-JAX mirror of the PyTorch forward (f32 compute, cast back to x.dtype)."""
    xf = x.astype(jnp.float32)
    nan_mask = jnp.isnan(xf)
    out = jnp.where(nan_mask, xf, jnp.zeros_like(xf))
    non_nan = ~nan_mask
    out = jnp.where(non_nan & (xf >= 0), xf, out)
    out = jnp.where(non_nan & (xf < 0), alpha * xf * jnp.exp(beta * xf), out)
    out = jnp.where(jnp.isinf(xf), xf, out)
    return out.astype(x.dtype)


if __name__ == "__main__":
    key = jax.random.PRNGKey(0)
    alpha = jnp.float32(0.01)  # alpha_init
    beta = jnp.float32(1.0)    # beta_init

    # 1) Small conv-feature-map shape, f32, with the special-value paths exercised.
    B, C, H, W = 2, 4, 16, 16
    x = 3.0 * jax.random.normal(key, (B, C, H, W), jnp.float32)
    x = x.at[0, 0, 0, 0].set(jnp.nan)
    x = x.at[0, 0, 0, 1].set(jnp.inf)
    x = x.at[0, 0, 0, 2].set(-jnp.inf)

    out = jax.block_until_ready(apelu_forward(x, alpha, beta))
    ref = _reference_apelu(x, alpha, beta)
    assert out.shape == x.shape and out.dtype == x.dtype
    assert bool(jnp.allclose(out, ref, atol=1e-6, rtol=1e-6, equal_nan=True))

    # 2) Shape whose row count does not divide the block (ragged last grid block).
    k2 = jax.random.PRNGKey(1)
    x2 = 2.0 * jax.random.normal(k2, (8, 40, 64), jnp.float32)
    out2 = jax.block_until_ready(apelu_forward(x2, alpha, beta))
    ref2 = _reference_apelu(x2, alpha, beta)
    assert bool(jnp.allclose(out2, ref2, atol=1e-6, rtol=1e-6))

    # 3) Size not a multiple of 128 (exercises the pad fallback path).
    k3 = jax.random.PRNGKey(2)
    x3 = jax.random.normal(k3, (2, 3, 5, 7), jnp.float32)
    out3 = jax.block_until_ready(apelu_forward(x3, alpha, beta))
    ref3 = _reference_apelu(x3, alpha, beta)
    assert out3.shape == x3.shape
    assert bool(jnp.allclose(out3, ref3, atol=1e-6, rtol=1e-6))

    # 4) bf16 input: streamed in bf16 through HBM, computed in f32 in-register.
    x4 = x.astype(jnp.bfloat16)
    out4 = jax.block_until_ready(apelu_forward(x4, alpha, beta))
    ref4 = _reference_apelu(x4, alpha, beta)
    assert out4.dtype == jnp.bfloat16
    assert bool(
        jnp.allclose(
            out4.astype(jnp.float32), ref4.astype(jnp.float32),
            atol=2e-2, rtol=2e-2, equal_nan=True,
        )
    )

    print("KERNEL_OK")
</pallas_src>

<mosaic_0001>
module attributes {stable_mosaic.version = 11 : i64} {
  func.func @_apelu_kernel(%arg0: i32, %arg1: memref<2xf32, #tpu.memory_space<smem>>, %arg2: memref<4x512xf32, #tpu.memory_space<vmem>>, %arg3: memref<4x512xf32, #tpu.memory_space<vmem>>) attributes {dimension_semantics = [#tpu.dimension_semantics<parallel>], iteration_bounds = array<i64: 1>, scalar_prefetch = 0 : i64, scratch_operands = 0 : i64, tpu.core_type = #tpu.core_type<tc>, window_params = [{transform_indices = @transform_0, window_bounds = array<i64: 2>}, {transform_indices = @transform_1, window_bounds = array<i64: 4, 512>}, {transform_indices = @transform_2, window_bounds = array<i64: 4, 512>}]} {
    %c0 = arith.constant 0 : index
    %0 = memref.load %arg1[%c0] : memref<2xf32, #tpu.memory_space<smem>>
    %c1 = arith.constant 1 : index
    %1 = memref.load %arg1[%c1] : memref<2xf32, #tpu.memory_space<smem>>
    %c0_0 = arith.constant 0 : index
    %c0_1 = arith.constant 0 : index
    %2 = vector.load %arg2[%c0_0, %c0_1] : memref<4x512xf32, #tpu.memory_space<vmem>>, vector<4x512xf32>
    %3 = vector.broadcast %0 : f32 to vector<4x512xf32>
    %4 = arith.mulf %3, %2 : vector<4x512xf32>
    %5 = vector.broadcast %1 : f32 to vector<4x512xf32>
    %6 = arith.mulf %5, %2 : vector<4x512xf32>
    %7 = math.exp %6 : vector<4x512xf32>
    %8 = arith.mulf %4, %7 : vector<4x512xf32>
    %cst = arith.constant 0.000000e+00 : f32
    %9 = vector.broadcast %cst : f32 to vector<4x512xf32>
    %10 = arith.cmpf olt, %2, %9 : vector<4x512xf32>
    %11 = arith.select %10, %8, %2 : vector<4x512xi1>, vector<4x512xf32>
    %cst_2 = arith.constant 0xFF800000 : f32
    %12 = vector.broadcast %cst_2 : f32 to vector<4x512xf32>
    %13 = arith.cmpf oeq, %2, %12 : vector<4x512xf32>
    %14 = arith.select %13, %2, %11 : vector<4x512xi1>, vector<4x512xf32>
    %c0_3 = arith.constant 0 : index
    %c0_4 = arith.constant 0 : index
    %15 = vector.load %arg3[%c0_3, %c0_4] : memref<4x512xf32, #tpu.memory_space<vmem>>, vector<4x512xf32>
    tpu.vector_store %arg3[%c0_3, %c0_4], %14 {strides = array<i32>} : memref<4x512xf32, #tpu.memory_space<vmem>>, vector<4x512xf32>,
    return
  }
  func.func @transform_0(%arg0: i32) -> i32 {
    %c0_i32 = arith.constant 0 : i32
    %c0_i32_0 = arith.constant 0 : i32
    return %c0_i32 : i32
  }
  func.func @transform_1(%arg0: i32) -> (i32, i32) {
    %c0_i32 = arith.constant 0 : i32
    %c0_i32_0 = arith.constant 0 : i32
    return %arg0, %c0_i32 : i32, i32
  }
  func.func @transform_2(%arg0: i32) -> (i32, i32) {
    %c0_i32 = arith.constant 0 : i32
    %c0_i32_0 = arith.constant 0 : i32
    return %arg0, %c0_i32 : i32, i32
  }
}

</mosaic_0001>

<bundles_post_ra>
// kernel: tpu_custom_call.1
= control target key start
LH: loop header
LB: loop body
LE: loop exit
PB: predicated region body
PF: predicated region fallthrough
CT: control target
= control target key end

     0   :  { %7 = vsyncpa [#allocation5], 0  ;;  %s166_s0 = inlined_call_operand.hbm [shape: f32[2], index: 0, kind: input, shape index: {}]   ;;  %s167_s1 = inlined_call_operand.hbm [shape: f32[4,512], index: 1, kind: input, shape index: {}]   ;;  %s168_s2 = inlined_call_operand.hbm [shape: f32[4,512], index: 2, kind: output, shape index: {}]  }
   0x1   :  { %8 = vsyncpa [#allocation3], 0 }
   0x2   :  { %9 = vsyncpa [#allocation4], 0  ;;  %s139_s9 = smov [#allocation2]   ;;  %s140_s12 = smov [#allocation6]  }
   0x3   :  { %17 = dma.hbm_to_smem %s166_s0, 16, %s139_s9, [#allocation5]  }
   0x4   :  { %s24_s13 = sshll.u32 %s140_s12, 4  ;;  %s25_s13 = int_to_ptr.vmem [resolvable:$true] %s24_s13 }
   0x5   :  { %s101_s14 = scalar_lea.vmem %s25_s13, 256  ;;  %p106_p1 = scmp.lt.s32.totalorder %s25_s13, %s25_s13 }
   0x6   :  { %p102_p0 = scmp.ne.s32.totalorder %s25_s13, %s101_s14  ;;  %p107_p2 = scmp.lt.s32.totalorder %s101_s14, %s101_s14 }
   0x8   :  { %p108_p3 = por %p107_p2, %p106_p1 }
   0xa   :  { %p109_p4 = pnand %p108_p3, %p102_p0 }
   0xc   :  { %112 = shalt.err (!%p109_p4)
}
   0xd   :  { %27 = dma.hbm_to_vmem [thread:$0]  %s167_s1, 256, %s25_s13, [#allocation3]  }
   0xe   :  { %133 = dma.done.wait [#allocation5], 16  }
   0xf   :  { %134 = vsyncadd [#allocation5], 4294967280 }
  0x10   :  { %135 = dma.done.wait [#allocation3], 256  }
  0x11   :  { %136 = vsyncadd [#allocation3], 4294967040 }
  0x12   :  { %34 = sfence }
  0x13   :  { %s77_s0 = sld [smem:[#allocation2 + $0x1]]  ;;  %v37_v0 = vld [vmem:[#allocation6] sm:$0xff]  ;;  %v38_v1 = vld [vmem:[#allocation6 + $0x8] sm:$0xff]  ;;  %s141_s1 = smov [#allocation7]  }
  0x14   :  { %s35_s17 = sld [smem:[#allocation2]]  ;;  %vm51_vm0 = vcmp.lt.f32.partialorder %v37_v0, 0.0  ;;  %vm55_vm1 = vcmp.eq.f32.partialorder %v37_v0, -inf  ;;  %vm52_vm2 = vcmp.lt.f32.partialorder %v38_v1, 0.0  ;;  %s67_s18 = sshll.u32 %s141_s1, 4  ;;  %vm56_vm3 = vcmp.eq.f32.partialorder %v38_v1, -inf  ;;  %s68_s18 = int_to_ptr.vmem [resolvable:$true] %s67_s18 }
  0x15   :  { %s113_s19 = scalar_lea.vmem %s68_s18, 256  ;;  %p118_p6 = scmp.lt.s32.totalorder %s68_s18, %s68_s18 }
  0x16   :  { %p114_p5 = scmp.ne.s32.totalorder %s68_s18, %s113_s19  ;;  %p119_p7 = scmp.lt.s32.totalorder %s113_s19, %s113_s19 }
  0x18   :  { %p120_p8 = por %p119_p7, %p118_p6 }
  0x19   :  { %v42_v2 = vstv %s77_s0 }
  0x1a   :  { %v43_v3 = vmul.f32 %v42_v2, %v37_v0  ;;  %v44_v4 = vmul.f32 %v42_v2, %v38_v1  ;;  %v39_v7 = vstv %s35_s17  ;;  %p121_p9 = pnand %p120_p8, %p114_p5 }
  0x1b   :  { %v40_v8 = vmul.f32 %v39_v7, %v37_v0  ;;  %v41_v9 = vmul.f32 %v39_v7, %v38_v1 }
  0x1c   :  { %v45_v5 = vmul.f32 1.442695, %v43_v3  ;;  %v47_v6 = vmul.f32 1.442695, %v44_v4 }
  0x1e   :  { %81 = vpow2.f32 %v45_v5 }
  0x1f   :  { %83 = vpow2.f32 %v47_v6 }
  0x2b   :  { %v82_v10 = vpop.eup %81 }
  0x2c   :  { %v84_v11 = vpop.eup %83  ;;  %v49_v12 = vmul.f32 %v82_v10, %v40_v8 }
  0x2d   :  { %v50_v13 = vmul.f32 %v84_v11, %v41_v9 }
  0x2e   :  { %v53_v14 = vsel %vm51_vm0, %v49_v12, %v37_v0 }
  0x2f   :  { %v57_v15 = vsel %vm55_vm1, %v37_v0, %v53_v14  ;;  %v54_v16 = vsel %vm52_vm2, %v50_v13, %v38_v1 }
  0x30   :  { %59 = vst [vmem:[#allocation7] sm:$0xff] %v57_v15  ;;  %v58_v17 = vsel %vm56_vm3, %v38_v1, %v54_v16 }
  0x31   :  { %60 = vst [vmem:[#allocation7 + $0x8] sm:$0xff] %v58_v17 }
  0x32   :  { %124 = shalt.err (!%p121_p9)
}
  0x33   :  { %70 = dma.vmem_to_hbm [thread:$0]  %s68_s18, 256, %s168_s2, [#allocation4]  }
  0x34   :  { %137 = dma.done.wait [#allocation4], 256  }
  0x35   :  { %138 = vsyncadd [#allocation4], 4294967040 }
  0x36   :  { %74 = vsyncpa [#allocation3], 1 }
  0x37   :  { %75 = vsyncpa [#allocation4], 1 }
  0x38   :  { %76 = vsyncpa [#allocation5], 1 }

</bundles_post_ra>
